<compile_context>
chip_gen: v7x
topology: tpu7x:2x2x1
jax: 0.10.0
libtpu: 0.0.40
codegen_flags: <defaults>
</compile_context>

<pallas_src>
import functools

import jax
import jax.numpy as jnp
from jax.experimental import pallas as pl
from jax.experimental.pallas import tpu as pltpu


def _sparsemax_loss_kernel(x_ref, tgt_ref, out_ref, *, batch, block_rows,
                           blocks_per_shard, needs_mask):
    # x_ref:   (TB, C) logits block, native dtype
    # tgt_ref: (TB, 1) int32 class indices block
    # out_ref: (1, 8, 128) f32 per-shard accumulator (resident across axis 1)
    s = pl.program_id(0)
    j = pl.program_id(1)

    @pl.when(j == 0)
    def _init():
        out_ref[...] = jnp.zeros_like(out_ref)

    x = x_ref[...].astype(jnp.float32)          # cast in-VMEM, not in the wrapper
    t = tgt_ref[...]                            # (TB, 1) int32
    tb, c = x.shape

    # one-hot is never materialized: we only need e at the target column.
    col = jax.lax.broadcasted_iota(jnp.int32, (tb, c), 1)
    is_t = col == t                             # (TB, C) bool

    m = jnp.max(x, axis=-1, keepdims=True)      # (TB, 1)
    e = jnp.exp(x - m)                          # (TB, C)
    ssum = jnp.sum(e, axis=-1, keepdims=True)   # (TB, 1)
    e_t = jnp.sum(jnp.where(is_t, e, 0.0), axis=-1, keepdims=True)
    sum_e2 = jnp.sum(e * e, axis=-1, keepdims=True)

    inv_s = pl.reciprocal(ssum, approx=True)    # EUP slot (free-ish)
    inv_s = inv_s * (2.0 - ssum * inv_s)        # one Newton step -> ~full f32 accuracy

    # 0.5 * sum((one_hot - p)^2) == 0.5*(1 + sum(p^2)) - p_target
    per_row = 0.5 * (sum_e2 * inv_s * inv_s + 1.0) - e_t * inv_s   # (TB, 1)

    if needs_mask:
        # Only the cheap (TB,1) mask: out-of-bounds/duplicated rows may hold
        # inf/NaN garbage, but rows are independent and this where discards them.
        start = (s * blocks_per_shard + j) * block_rows
        row = jax.lax.broadcasted_iota(jnp.int32, (tb, 1), 0) + start
        per_row = jnp.where(row < batch, per_row, 0.0)

    block_sum = jnp.sum(per_row)                # scalar partial batch sum
    out_ref[...] = out_ref[...] + block_sum     # broadcast into resident block


def _sublane_align(itemsize):
    # f32 -> 8, bf16 -> 16, int8/fp8 -> 32 (native-dtype blocks pack along sublanes)
    return 8 * max(1, 4 // int(itemsize))


def _vmem_capacity_bytes():
    try:
        return int(pltpu.get_tpu_info().vmem_capacity_bytes)
    except Exception:
        return 64 * 1024 * 1024                 # conservative: v7x per-TC VMEM


def _pick_block_rows(batch, num_classes, itemsize, align, vmem_cap):
    """Biggest batch-block that (a) is ~3-4 MiB of logits and (b) fits the VMEM
    budget once double-buffering, f32 temporaries and target-tile padding count."""
    big_vmem = vmem_cap >= 96 * 1024 * 1024     # v5e/v6e (128 MiB) vs v7x (64 MiB)
    target_block_bytes = (4 if big_vmem else 3) * 1024 * 1024
    # per-row VMEM cost: 2x native logits (double buffer) + ~3x f32 temporaries
    # (x cast, e, e*e) + 2x lane-padded (TB,1) int32 target tile (128 lanes).
    per_row = 2 * num_classes * itemsize + 3 * num_classes * 4 + 2 * 128 * 4
    usable = vmem_cap // 2                      # leave headroom for pipeline/output
    tb = min(target_block_bytes // max(1, num_classes * itemsize),
             usable // max(1, per_row),
             4096)
    tb = int(min(tb, batch))
    if tb >= batch:
        return batch                            # full extent: exempt from tiling rule
    tb = max(align, (tb // align) * align)      # dtype-aware sublane alignment
    # TODO(synk): for vocab-scale C where even an `align`-row block blows the VMEM
    # budget, add an inner C-chunk axis with an online (flash-style) softmax.
    return min(tb, batch)


def _vmem_limit_bytes(tb, num_classes, itemsize, vmem_cap):
    need = (2 * tb * num_classes * itemsize     # double-buffered native logits
            + 3 * tb * num_classes * 4          # f32 temporaries (x, e, e^2)
            + 2 * tb * 128 * 4                  # lane-padded target tiles
            + 2 * 8 * 128 * 4                   # output block
            + 2 * 1024 * 1024)                  # slack
    cap = max(32 * 1024 * 1024, vmem_cap - 16 * 1024 * 1024)
    return int(min(max(32 * 1024 * 1024, need), cap))


def sparsemax_loss(logits, target, block_rows=None):
    """logits: (B, C) float (any float dtype); target: (B,) int. Returns scalar f32."""
    B, C = logits.shape
    itemsize = jnp.dtype(logits.dtype).itemsize
    tgt2d = target.astype(jnp.int32).reshape(B, 1)

    vmem_cap = _vmem_capacity_bytes()
    align = _sublane_align(itemsize)
    TB = block_rows or _pick_block_rows(B, C, itemsize, align, vmem_cap)
    nb = pl.cdiv(B, TB)

    # Two shards on the leading "parallel" axis -> both v7x TensorCores; on 1-TC
    # parts this is just one extra (cheap) grid step.
    num_shards = 2 if nb >= 2 else 1
    nbs = pl.cdiv(nb, num_shards)               # blocks per shard
    exact_blocks = (num_shards * nbs == nb)
    needs_mask = (num_shards * nbs * TB) != B   # ragged batch and/or duplicated block

    if exact_blocks:
        def block_index(sidx, j):
            return sidx * nbs + j
    else:
        def block_index(sidx, j):               # clamp OOB block; mask zeroes its rows
            return jnp.minimum(sidx * nbs + j, nb - 1)

    kernel = functools.partial(
        _sparsemax_loss_kernel, batch=B, block_rows=TB,
        blocks_per_shard=nbs, needs_mask=needs_mask)

    out = pl.pallas_call(
        kernel,
        out_shape=jax.ShapeDtypeStruct((num_shards, 8, 128), jnp.float32),
        grid=(num_shards, nbs),
        in_specs=[
            pl.BlockSpec((TB, C), lambda s, j: (block_index(s, j), 0)),
            pl.BlockSpec((TB, 1), lambda s, j: (block_index(s, j), 0)),
        ],
        out_specs=pl.BlockSpec((1, 8, 128), lambda s, j: (s, 0, 0)),
        compiler_params=pltpu.CompilerParams(
            dimension_semantics=("parallel", "arbitrary"),
            vmem_limit_bytes=_vmem_limit_bytes(TB, C, itemsize, vmem_cap),
        ),
        cost_estimate=pl.CostEstimate(
            flops=8 * B * C,
            transcendentals=B * C,
            bytes_accessed=B * C * itemsize + B * 4 + num_shards * 8 * 128 * 4,
        ),
    )(logits, tgt2d)

    # Per-shard partial sums -> mean over the true batch size (done in the wrapper).
    return jnp.sum(out[:, 0, 0]) * (1.0 / float(B))


def sparsemax_loss_ref(logits, target):
    """Pure-JAX reference matching the PyTorch module."""
    C = logits.shape[-1]
    one_hot = jnp.eye(C, dtype=jnp.float32)[target]
    x = logits.astype(jnp.float32)
    lmm = x - jnp.max(x, axis=-1, keepdims=True)
    e = jnp.exp(lmm)
    s = jnp.sum(e, axis=-1, keepdims=True)
    loss = 0.5 * jnp.sum((one_hot - e / s) ** 2, axis=-1)
    return jnp.mean(loss)


if __name__ == "__main__":
    key = jax.random.PRNGKey(0)
    k1, k2, k3, k4, k5, k6 = jax.random.split(key, 6)

    # Small shape consistent with the module's (B, num_classes) forward.
    B, C = 8, 32
    logits = jax.random.normal(k1, (B, C), dtype=jnp.float32)
    target = jax.random.randint(k2, (B,), 0, C, dtype=jnp.int32)
    out = jax.block_until_ready(sparsemax_loss(logits, target))
    ref = sparsemax_loss_ref(logits, target)
    assert jnp.allclose(out, ref, rtol=1e-5, atol=1e-6), (out, ref)

    # Gridded / partial-last-block / two-shard path (B not a multiple of TB).
    B2, C2 = 200, 128
    logits2 = jax.random.normal(k3, (B2, C2), dtype=jnp.float32)
    target2 = jax.random.randint(k4, (B2,), 0, C2, dtype=jnp.int32)
    out2 = jax.block_until_ready(sparsemax_loss(logits2, target2, block_rows=64))
    ref2 = sparsemax_loss_ref(logits2, target2)
    assert jnp.allclose(out2, ref2, rtol=1e-5, atol=1e-6), (out2, ref2)

    # bf16 inputs with odd block count (exercises clamped block + 16-row alignment).
    B3, C3 = 48, 256
    logits3 = jax.random.normal(k5, (B3, C3), dtype=jnp.float32).astype(jnp.bfloat16)
    target3 = jax.random.randint(k6, (B3,), 0, C3, dtype=jnp.int32)
    out3 = jax.block_until_ready(sparsemax_loss(logits3, target3, block_rows=16))
    ref3 = sparsemax_loss_ref(logits3, target3)
    assert jnp.allclose(out3, ref3, rtol=1e-4, atol=1e-5), (out3, ref3)

    print("KERNEL_OK")
</pallas_src>

<mosaic_0001>
module attributes {stable_mosaic.version = 11 : i64} {
  func.func @_sparsemax_loss_kernel(%arg0: i32, %arg1: i32, %arg2: memref<8x32xf32, #tpu.memory_space<vmem>>, %arg3: memref<8x1xi32, #tpu.memory_space<vmem>>, %arg4: memref<1x8x128xf32, #tpu.memory_space<vmem>>) attributes {dimension_semantics = [#tpu.dimension_semantics<parallel>, #tpu.dimension_semantics<arbitrary>], iteration_bounds = array<i64: 1, 1>, scalar_prefetch = 0 : i64, scratch_operands = 0 : i64, tpu.core_type = #tpu.core_type<tc>, window_params = [{transform_indices = @transform_0, window_bounds = array<i64: 8, 32>}, {transform_indices = @transform_1, window_bounds = array<i64: 8, 1>}, {transform_indices = @transform_2, window_bounds = array<i64: 1, 8, 128>}]} {
    %c0_i32 = arith.constant 0 : i32
    %0 = arith.cmpi eq, %arg1, %c0_i32 : i32
    %1 = arith.extui %0 : i1 to i32
    %c0_i32_0 = arith.constant 0 : i32
    %2 = arith.cmpi ne, %1, %c0_i32_0 : i32
    scf.if %2 {
      %cst_18 = arith.constant 0.000000e+00 : f32
      %43 = vector.broadcast %cst_18 : f32 to vector<1x8x128xf32>
      %c0_19 = arith.constant 0 : index
      %c0_20 = arith.constant 0 : index
      %c0_21 = arith.constant 0 : index
      %44 = vector.load %arg4[%c0_19, %c0_20, %c0_21] : memref<1x8x128xf32, #tpu.memory_space<vmem>>, vector<1x8x128xf32>
      tpu.vector_store %arg4[%c0_19, %c0_20, %c0_21], %43 {strides = array<i32>} : memref<1x8x128xf32, #tpu.memory_space<vmem>>, vector<1x8x128xf32>,
    } else {
    }
    %c0 = arith.constant 0 : index
    %c0_1 = arith.constant 0 : index
    %3 = vector.load %arg2[%c0, %c0_1] : memref<8x32xf32, #tpu.memory_space<vmem>>, vector<8x32xf32>
    %c0_2 = arith.constant 0 : index
    %c0_3 = arith.constant 0 : index
    %4 = vector.load %arg3[%c0_2, %c0_3] : memref<8x1xi32, #tpu.memory_space<vmem>>, vector<8x1xi32>
    %5 = tpu.iota {dimensions = array<i32: 1>} : vector<8x32xi32>
    %6 = vector.broadcast %4 : vector<8x1xi32> to vector<8x32xi32>
    %7 = arith.cmpi eq, %5, %6 : vector<8x32xi32>
    %cst = arith.constant dense<0xFF800000> : vector<8xf32>
    %8 = vector.multi_reduction <maximumf>, %3, %cst [1] : vector<8x32xf32> to vector<8xf32>
    %9 = vector.shape_cast %8 : vector<8xf32> to vector<8x1xf32>
    %10 = vector.broadcast %9 : vector<8x1xf32> to vector<8x32xf32>
    %11 = arith.subf %3, %10 : vector<8x32xf32>
    %12 = math.exp %11 : vector<8x32xf32>
    %cst_4 = arith.constant dense<0.000000e+00> : vector<8xf32>
    %13 = vector.multi_reduction <add>, %12, %cst_4 [1] : vector<8x32xf32> to vector<8xf32>
    %14 = vector.shape_cast %13 : vector<8xf32> to vector<8x1xf32>
    %cst_5 = arith.constant 0.000000e+00 : f32
    %15 = vector.broadcast %cst_5 : f32 to vector<8x32xf32>
    %16 = arith.select %7, %12, %15 : vector<8x32xi1>, vector<8x32xf32>
    %cst_6 = arith.constant dense<0.000000e+00> : vector<8xf32>
    %17 = vector.multi_reduction <add>, %16, %cst_6 [1] : vector<8x32xf32> to vector<8xf32>
    %18 = vector.shape_cast %17 : vector<8xf32> to vector<8x1xf32>
    %19 = arith.mulf %12, %12 : vector<8x32xf32>
    %cst_7 = arith.constant dense<0.000000e+00> : vector<8xf32>
    %20 = vector.multi_reduction <add>, %19, %cst_7 [1] : vector<8x32xf32> to vector<8xf32>
    %21 = vector.shape_cast %20 : vector<8xf32> to vector<8x1xf32>
    %22 = tpu.reciprocal %14 {approx = true} : vector<8x1xf32> -> vector<8x1xf32>
    %23 = arith.mulf %14, %22 : vector<8x1xf32>
    %cst_8 = arith.constant 2.000000e+00 : f32
    %24 = vector.broadcast %cst_8 : f32 to vector<8x1xf32>
    %25 = arith.subf %24, %23 : vector<8x1xf32>
    %26 = arith.mulf %22, %25 : vector<8x1xf32>
    %27 = arith.mulf %21, %26 : vector<8x1xf32>
    %28 = arith.mulf %27, %26 : vector<8x1xf32>
    %cst_9 = arith.constant 1.000000e+00 : f32
    %29 = vector.broadcast %cst_9 : f32 to vector<8x1xf32>
    %30 = arith.addf %28, %29 : vector<8x1xf32>
    %cst_10 = arith.constant 5.000000e-01 : f32
    %31 = vector.broadcast %cst_10 : f32 to vector<8x1xf32>
    %32 = arith.mulf %31, %30 : vector<8x1xf32>
    %33 = arith.mulf %18, %26 : vector<8x1xf32>
    %34 = arith.subf %32, %33 : vector<8x1xf32>
    %35 = vector.shape_cast %34 : vector<8x1xf32> to vector<1x8x1xf32>
    %cst_11 = arith.constant dense<0.000000e+00> : vector<1xf32>
    %36 = vector.multi_reduction <add>, %35, %cst_11 [1, 2] : vector<1x8x1xf32> to vector<1xf32>
    %37 = vector.shape_cast %36 : vector<1xf32> to vector<1x1x1xf32>
    %38 = vector.extract %37[0, 0, 0] : f32 from vector<1x1x1xf32>
    %c0_12 = arith.constant 0 : index
    %c0_13 = arith.constant 0 : index
    %c0_14 = arith.constant 0 : index
    %39 = vector.load %arg4[%c0_12, %c0_13, %c0_14] : memref<1x8x128xf32, #tpu.memory_space<vmem>>, vector<1x8x128xf32>
    %40 = vector.broadcast %38 : f32 to vector<1x8x128xf32>
    %41 = arith.addf %39, %40 : vector<1x8x128xf32>
    %c0_15 = arith.constant 0 : index
    %c0_16 = arith.constant 0 : index
    %c0_17 = arith.constant 0 : index
    %42 = vector.load %arg4[%c0_15, %c0_16, %c0_17] : memref<1x8x128xf32, #tpu.memory_space<vmem>>, vector<1x8x128xf32>
    tpu.vector_store %arg4[%c0_15, %c0_16, %c0_17], %41 {strides = array<i32>} : memref<1x8x128xf32, #tpu.memory_space<vmem>>, vector<1x8x128xf32>,
    return
  }
  func.func @transform_0(%arg0: i32, %arg1: i32) -> (i32, i32) {
    %c1_i32 = arith.constant 1 : i32
    %0 = arith.muli %arg0, %c1_i32 : i32
    %1 = arith.addi %0, %arg1 : i32
    %c0_i32 = arith.constant 0 : i32
    %c0_i32_0 = arith.constant 0 : i32
    return %1, %c0_i32 : i32, i32
  }
  func.func @transform_1(%arg0: i32, %arg1: i32) -> (i32, i32) {
    %c1_i32 = arith.constant 1 : i32
    %0 = arith.muli %arg0, %c1_i32 : i32
    %1 = arith.addi %0, %arg1 : i32
    %c0_i32 = arith.constant 0 : i32
    %c0_i32_0 = arith.constant 0 : i32
    return %1, %c0_i32 : i32, i32
  }
  func.func @transform_2(%arg0: i32, %arg1: i32) -> (i32, i32, i32) {
    %c0_i32 = arith.constant 0 : i32
    %c0_i32_0 = arith.constant 0 : i32
    %c0_i32_1 = arith.constant 0 : i32
    return %arg0, %c0_i32, %c0_i32_0 : i32, i32, i32
  }
}

</mosaic_0001>

<bundles_post_ra>
// kernel: tpu_custom_call.1
= control target key start
LH: loop header
LB: loop body
LE: loop exit
PB: predicated region body
PF: predicated region fallthrough
CT: control target
= control target key end

     0   :  { %vm59_vm0 = vcmask 261120   ;;  %s201_s0 = inlined_call_operand.vmem [shape: f32[8,32], index: 0, kind: input, shape index: {}]   ;;  %s202_s1 = inlined_call_operand.vmem [shape: s32[8,1], index: 1, kind: input, shape index: {}]   ;;  %s203_s2 = inlined_call_operand.hbm [shape: f32[1,8,128], index: 2, kind: output, shape index: {}]  }
   0x1   :  { %v51_v0 = vld [vmem:[%s201_s0] sm:$0xff] }
   0x2   :  { %7 = vsyncpa [#allocation3], 0  ;;  %v60_v1 = vsel %vm59_vm0, %v51_v0, -inf  ;;  %v162_v2 = vmov 0   ;;  %v52_v3 = vld [vmem:[%s202_s1] sm:$0xff]  ;;  %v53_v7 = vlaneseq  ;;  %vm87_vm2 = vcmask 7168  }
   0x3   :  { %133 = vset.pattern.permute.xlu0 %v162_v2  ;;  %s163_s0 = smov [#allocation2]  }
   0x4   :  { %61 = vmax.xlane.f32.xlu0 %v60_v1  ;;  %v54_v8 = vand.u32 127, %v53_v7  ;;  %s108_s1 = sshll.u32 %s163_s0, 4  ;;  %s109_s1 = int_to_ptr.vmem [resolvable:$true] %s108_s1 }
   0x5   :  { %s138_s14 = scalar_lea.vmem %s109_s1, 128  ;;  %p143_p1 = scmp.lt.s32.totalorder %s109_s1, %s109_s1 }
   0x6   :  { %p139_p0 = scmp.ne.s32.totalorder %s109_s1, %s138_s14  ;;  %p144_p2 = scmp.lt.s32.totalorder %s138_s14, %s138_s14 }
   0x8   :  { %p145_p3 = por %p144_p2, %p143_p1 }
   0xa   :  { %p146_p4 = pnand %p145_p3, %p139_p0 }
  0x1a   :  { %56 = vperm.xlu0 %133, %v52_v3  }
  0x91   :  { %v62_v4 = vpop.xlane.xlu0 %61 }
  0x92   :  { %v63_v5 = vsub.f32 %v51_v0, %v62_v4 }
  0x94   :  { %v64_v6 = vmul.f32 1.442695, %v63_v5 }
  0x96   :  { %134 = vpow2.f32 %v64_v6 }
  0x99   :  { %v57_v10 = vpop.permute.xlu0 %56 }
  0x9a   :  { %vm58_vm1 = vcmp.eq.s32.totalorder %v54_v8, %v57_v10 }
  0xa0   :  { %v135_v9 = vpop.eup %134 }
  0xa1   :  { %v66_v11 = vsel %vm59_vm0, %v135_v9, 0.0  ;;  %v73_v12 = vmul.f32 %v135_v9, %v135_v9  ;;  %v69_v14 = vsel %vm58_vm1, %v135_v9, 0.0 }
  0xa2   :  { %67 = vadd.xlane.f32.xlu1 %v66_v11  ;;  %v70_v15 = vsel %vm59_vm0, %v69_v14, 0.0 }
  0xa3   :  { %v74_v13 = vsel %vm59_vm0, %v73_v12, 0.0 }
  0xa6   :  { %75 = vadd.xlane.f32.xlu1 %v74_v13 }
  0xaa   :  { %71 = vadd.xlane.f32.xlu1 %v70_v15 }
 0x12f   :  { %v68_v16 = vpop.xlane.xlu1 %67 }
 0x130   :  { %136 = vrcp.f32 %v68_v16 }
 0x133   :  { %v76_v21 = vpop.xlane.xlu1 %75 }
 0x137   :  { %v72_v25 = vpop.xlane.xlu1 %71 }
 0x13a   :  { %v137_v17 = vpop.eup %136 }
 0x13b   :  { %v78_v18 = vmul.f32 %v137_v17, %v68_v16 }
 0x13d   :  { %v79_v19 = vsub.f32 2.0, %v78_v18 }
 0x13f   :  { %v80_v20 = vmul.f32 %v137_v17, %v79_v19 }
 0x141   :  { %v81_v22 = vmul.f32 %v80_v20, %v76_v21  ;;  %v85_v27 = vmul.f32 %v80_v20, %v72_v25 }
 0x143   :  { %v82_v23 = vmul.f32 %v81_v22, %v80_v20 }
 0x145   :  { %v83_v24 = vadd.f32 1.0, %v82_v23 }
 0x147   :  { %v84_v26 = vmul.f32 0.5, %v83_v24 }
 0x149   :  { %v86_v28 = vsub.f32 %v84_v26, %v85_v27 }
 0x14b   :  { %v88_v29 = vsel %vm87_vm2, %v86_v28, 0.0 }
 0x14c   :  { %89 = vadd.xlane.f32.xlu1 %v88_v29 }
 0x1d9   :  { %v90_v30 = vpop.xlane.xlu1 %89 }
 0x1da   :  { %v91_v31 = vrot.slane %v90_v30, 4 }
 0x1dc   :  { %v92_v32 = vadd.f32 %v91_v31, %v90_v30 }
 0x1de   :  { %v93_v33 = vrot.slane %v92_v32, 2 }
 0x1e0   :  { %v94_v34 = vadd.f32 %v93_v33, %v92_v32 }
 0x1e2   :  { %v95_v35 = vrot.slane %v94_v34, 1 }
 0x1e4   :  { %v96_v36 = vadd.f32 %v95_v35, %v94_v34 }
 0x1e6   :  { %128 = vpush %v96_v36 }
 0x217   :  { %s129_s13 = spop %128 }
 0x218   :  { %v99_v37 = vstv %s129_s13 }
 0x219   :  { %101 = vst [vmem:[#allocation2] sm:$0xff] %v99_v37 }
 0x21a   :  { %149 = shalt.err (!%p146_p4)
}
 0x21b   :  { %s150_s17 = scalar_lea.hbm %s203_s2, 128 }
 0x21c   :  { %p151_p5 = scmp.ne.s32.totalorder %s203_s2, %s150_s17  ;;  %p154_p6 = scmp.lt.u32.totalorder %s150_s17, %s203_s2 }
 0x21e   :  { %p156_p7 = pnand %p154_p6, %p151_p5 }
 0x220   :  { %159 = shalt.err (!%p156_p7)
}
 0x221   :  { %111 = dma.vmem_to_hbm [thread:$0]  %s109_s1, 128, %s203_s2, [#allocation3]  }
 0x222   :  { %160 = dma.done.wait [#allocation3], 128  }
 0x223   :  { %161 = vsyncadd [#allocation3], 4294967168 }
 0x224   :  { %115 = vsyncpa [#allocation3], 1 }

</bundles_post_ra>
